<compile_context>
chip_gen: v6e
topology: v6e:2x2x1
jax: 0.10.0
libtpu: 0.0.40
codegen_flags: <defaults>
</compile_context>

<pallas_src>
import math

import jax
import jax.numpy as jnp
from jax.experimental import pallas as pl
from jax.experimental.pallas import tpu as pltpu


def _linear_diagonal_kernel(x_ref, d_ref, o_ref):
    # x_ref: (tile_rows, tile_cols) tile of the (possibly folded) feature slab
    # d_ref: (1, tile_cols)         matching slice of the (tiled) diagonal
    o_ref[...] = x_ref[...] * d_ref[...]


def _sublane_quantum(dtype) -> int:
    nbytes = jnp.dtype(dtype).itemsize
    return {4: 8, 2: 16, 1: 32}.get(nbytes, 8)


def _vmem_capacity_bytes() -> int:
    """Physical VMEM of the local TPU; conservative (v7x-sized) fallback."""
    try:
        info = pltpu.get_tpu_info()
        cap = int(getattr(info, "vmem_capacity_bytes", 0))
        if cap > 0:
            return cap
    except Exception:
        pass
    return 64 * 1024 * 1024


def linear_diagonal(features: jax.Array, diagonal: jax.Array) -> jax.Array:
    """out = features * diagonal  (diagonal broadcast over the last axis)."""
    orig_shape = features.shape
    n_features = orig_shape[-1]
    assert diagonal.shape == (n_features,), (diagonal.shape, n_features)

    # Output follows the feature dtype; cast the diagonal once in the wrapper.
    out_dtype = features.dtype
    diag = diagonal.astype(out_dtype)

    x2d = features.reshape(-1, n_features)
    rows, cols = x2d.shape

    # ---- lane-dense fold --------------------------------------------------
    # If the feature dim isn't a multiple of 128, fold whole rows into the
    # lane axis so the output slab is lane-dense (unmasked full-width stores).
    if cols % 128 != 0 and rows > 1:
        k = 128 // math.gcd(cols, 128)
        if rows % k == 0:
            rows //= k
            cols *= k
            x2d = x2d.reshape(rows, cols)
            diag = jnp.tile(diag, k)
    d2d = diag.reshape(1, cols)

    # ---- generation-aware VMEM budget (input + output, double-buffered) ----
    vmem_cap = _vmem_capacity_bytes()
    vmem_limit = min(vmem_cap // 2, 64 * 1024 * 1024)   # v7x: 32 MiB, v5e/v6e: 64 MiB
    # Budget for ONE (input tile + output tile) pair; double-buffering makes
    # the resident footprint ~2x this (+ the diagonal), i.e. <= ~3/4 of limit.
    tile_pair_budget = (vmem_limit * 3) // 8

    itemsize = jnp.dtype(out_dtype).itemsize
    per_elem = 2 * itemsize                 # input + output element (same dtype)
    quantum = _sublane_quantum(out_dtype)

    # ---- column (lane) tile: full width unless it truly doesn't fit --------
    max_cols = max(128, (tile_pair_budget // (per_elem * quantum)) // 128 * 128)
    tile_cols = cols if cols <= max_cols else max_cols

    # ---- row (sublane) tile from the remaining budget -----------------------
    budget_rows = max(quantum, tile_pair_budget // (tile_cols * per_elem))
    budget_rows = max(quantum, (budget_rows // quantum) * quantum)
    if rows <= quantum:
        tile_rows = rows                    # full dim -> always a legal block
    else:
        # Keep >= 2 row blocks so megacore (v7x: 2 TCs) can shard the grid.
        half_rows = max(quantum, (((rows + 1) // 2) // quantum) * quantum)
        tile_rows = min(budget_rows, half_rows)

    n_col_blocks = pl.cdiv(cols, tile_cols)
    n_row_blocks = pl.cdiv(rows, tile_rows)

    # Column axis OUTER, rows inner: the diagonal block index only changes
    # when the column block changes, so its DMA is not re-issued per row step.
    grid = (n_col_blocks, n_row_blocks)

    out2d = pl.pallas_call(
        _linear_diagonal_kernel,
        out_shape=jax.ShapeDtypeStruct((rows, cols), out_dtype),
        grid_spec=pltpu.PrefetchScalarGridSpec(
            num_scalar_prefetch=0,
            grid=grid,
            in_specs=[
                pl.BlockSpec((tile_rows, tile_cols), lambda j, i: (i, j)),
                pl.BlockSpec((1, tile_cols), lambda j, i: (0, j)),
            ],
            out_specs=pl.BlockSpec((tile_rows, tile_cols), lambda j, i: (i, j)),
        ),
        compiler_params=pltpu.CompilerParams(
            dimension_semantics=("parallel", "parallel"),
            vmem_limit_bytes=vmem_limit,
        ),
    )(x2d, d2d)

    return out2d.reshape(orig_shape)


if __name__ == "__main__":
    key = jax.random.PRNGKey(0)
    k_diag, k1, k2, k3, k4 = jax.random.split(key, 5)

    sigma = 0.01

    # Case 1: 2-D features, n_features multiple of 128 (lane-dense already).
    batch, n_features = 8, 128
    diagonal = jax.random.normal(k_diag, (n_features,), dtype=jnp.float32) * sigma
    features = jax.random.normal(k1, (batch, n_features), dtype=jnp.float32)
    out = jax.block_until_ready(linear_diagonal(features, diagonal))
    ref = features * diagonal
    assert out.shape == ref.shape and out.dtype == ref.dtype
    assert jnp.allclose(out, ref, atol=1e-6, rtol=1e-6)

    # Case 2: 3-D features (leading dims flattened to rows).
    features3 = jax.random.normal(k2, (2, 3, n_features), dtype=jnp.float32)
    out3 = jax.block_until_ready(linear_diagonal(features3, diagonal))
    ref3 = features3 * diagonal
    assert out3.shape == ref3.shape
    assert jnp.allclose(out3, ref3, atol=1e-6, rtol=1e-6)

    # Case 3: n_features = 64 -> rows folded into lanes (lane-dense path).
    nf64 = 64
    diag64 = jax.random.normal(k3, (nf64,), dtype=jnp.float32) * sigma
    feat64 = jax.random.normal(k4, (8, nf64), dtype=jnp.float32)
    out64 = jax.block_until_ready(linear_diagonal(feat64, diag64))
    ref64 = feat64 * diag64
    assert out64.shape == ref64.shape
    assert jnp.allclose(out64, ref64, atol=1e-6, rtol=1e-6)

    # Case 4: ragged feature dim that cannot fold -> full-dim (masked) block.
    nf100 = 100
    diag100 = jax.random.normal(k3, (nf100,), dtype=jnp.float32) * sigma
    feat100 = jax.random.normal(k4, (6, nf100), dtype=jnp.float32)
    out100 = jax.block_until_ready(linear_diagonal(feat100, diag100))
    ref100 = feat100 * diag100
    assert out100.shape == ref100.shape
    assert jnp.allclose(out100, ref100, atol=1e-6, rtol=1e-6)

    print("KERNEL_OK")
</pallas_src>

<mosaic_0001>
module attributes {stable_mosaic.version = 11 : i64} {
  func.func @_linear_diagonal_kernel(%arg0: i32, %arg1: i32, %arg2: memref<8x128xf32, #tpu.memory_space<vmem>>, %arg3: memref<1x128xf32, #tpu.memory_space<vmem>>, %arg4: memref<8x128xf32, #tpu.memory_space<vmem>>) attributes {dimension_semantics = [#tpu.dimension_semantics<parallel>, #tpu.dimension_semantics<parallel>], iteration_bounds = array<i64: 1, 1>, scalar_prefetch = 0 : i64, scratch_operands = 0 : i64, tpu.core_type = #tpu.core_type<tc>, window_params = [{transform_indices = @transform_0, window_bounds = array<i64: 8, 128>}, {transform_indices = @transform_1, window_bounds = array<i64: 1, 128>}, {transform_indices = @transform_2, window_bounds = array<i64: 8, 128>}]} {
    %c0 = arith.constant 0 : index
    %c0_0 = arith.constant 0 : index
    %0 = vector.load %arg2[%c0, %c0_0] : memref<8x128xf32, #tpu.memory_space<vmem>>, vector<8x128xf32>
    %c0_1 = arith.constant 0 : index
    %c0_2 = arith.constant 0 : index
    %1 = vector.load %arg3[%c0_1, %c0_2] : memref<1x128xf32, #tpu.memory_space<vmem>>, vector<1x128xf32>
    %2 = vector.broadcast %1 : vector<1x128xf32> to vector<8x128xf32>
    %3 = arith.mulf %0, %2 : vector<8x128xf32>
    %c0_3 = arith.constant 0 : index
    %c0_4 = arith.constant 0 : index
    %4 = vector.load %arg4[%c0_3, %c0_4] : memref<8x128xf32, #tpu.memory_space<vmem>>, vector<8x128xf32>
    tpu.vector_store %arg4[%c0_3, %c0_4], %3 {strides = array<i32>} : memref<8x128xf32, #tpu.memory_space<vmem>>, vector<8x128xf32>,
    return
  }
  func.func @transform_0(%arg0: i32, %arg1: i32) -> (i32, i32) {
    %c0_i32 = arith.constant 0 : i32
    return %arg1, %arg0 : i32, i32
  }
  func.func @transform_1(%arg0: i32, %arg1: i32) -> (i32, i32) {
    %c0_i32 = arith.constant 0 : i32
    %c0_i32_0 = arith.constant 0 : i32
    return %c0_i32, %arg0 : i32, i32
  }
  func.func @transform_2(%arg0: i32, %arg1: i32) -> (i32, i32) {
    %c0_i32 = arith.constant 0 : i32
    return %arg1, %arg0 : i32, i32
  }
}

</mosaic_0001>

<bundles_post_ra>
// kernel: tpu_custom_call.1
= control target key start
LH: loop header
LB: loop body
LE: loop exit
PB: predicated region body
PF: predicated region fallthrough
CT: control target
= control target key end

     0   :  { %7 = vsyncpa [#allocation3], 0  ;;  %s122_s0 = inlined_call_operand.hbm [shape: f32[8,128], index: 0, kind: input, shape index: {}]   ;;  %s123_s1 = inlined_call_operand.vmem [shape: f32[1,128], index: 1, kind: input, shape index: {}]   ;;  %s124_s2 = inlined_call_operand.hbm [shape: f32[8,128], index: 2, kind: output, shape index: {}]  }
   0x1   :  { %8 = vsyncpa [#allocation4], 0  ;;  %s96_s9 = smov [#allocation2]  }
   0x2   :  { %s15_s10 = sshll.u32 %s96_s9, 4  ;;  %s16_s10 = int_to_ptr.vmem [resolvable:$true] %s15_s10 }
   0x3   :  { %s60_s11 = scalar_lea.vmem %s16_s10, 128  ;;  %p65_p1 = scmp.lt.s32.totalorder %s16_s10, %s16_s10 }
   0x4   :  { %p61_p0 = scmp.ne.s32.totalorder %s16_s10, %s60_s11  ;;  %p66_p2 = scmp.lt.s32.totalorder %s60_s11, %s60_s11 }
   0x6   :  { %p67_p3 = por %p66_p2, %p65_p1 }
   0x8   :  { %p68_p4 = pnand %p67_p3, %p61_p0 }
   0xa   :  { %71 = shalt.err (!%p68_p4)
}
   0xb   :  { %18 = dma.hbm_to_vmem [thread:$0]  %s122_s0, 128, %s16_s10, [#allocation3]  }
   0xc   :  { %92 = dma.done.wait [#allocation3], 128  }
   0xd   :  { %93 = vsyncadd [#allocation3], 4294967168  ;;  %s97_s14 = smov [#allocation5]   ;;  %v24_v0 = vld [vmem:[#allocation2] sm:$0xff] }
   0xe   :  { %s40_s15 = sshll.u32 %s97_s14, 4  ;;  %v49_v1 = vld [vmem:[%s123_s1] ss:$0 sm:$0xff]  ;;  %s41_s15 = int_to_ptr.vmem [resolvable:$true] %s40_s15 }
   0xf   :  { %v32_v2 = vmul.f32 %v49_v1, %v24_v0  ;;  %s72_s18 = scalar_lea.vmem %s41_s15, 128  ;;  %p77_p6 = scmp.lt.s32.totalorder %s41_s15, %s41_s15 }
  0x10   :  { %p73_p5 = scmp.ne.s32.totalorder %s41_s15, %s72_s18  ;;  %p78_p7 = scmp.lt.s32.totalorder %s72_s18, %s72_s18 }
  0x11   :  { %33 = vst [vmem:[#allocation5] sm:$0xff] %v32_v2 }
  0x12   :  { %p79_p8 = por %p78_p7, %p77_p6 }
  0x14   :  { %p80_p9 = pnand %p79_p8, %p73_p5 }
  0x16   :  { %83 = shalt.err (!%p80_p9)
}
  0x17   :  { %43 = dma.vmem_to_hbm [thread:$0]  %s41_s15, 128, %s124_s2, [#allocation4]  }
  0x18   :  { %94 = dma.done.wait [#allocation4], 128  }
  0x19   :  { %95 = vsyncadd [#allocation4], 4294967168 }
  0x1a   :  { %47 = vsyncpa [#allocation3], 1 }
  0x1b   :  { %48 = vsyncpa [#allocation4], 1 }

</bundles_post_ra>
